<compile_context>
chip_gen: v6e
topology: v6e:2x2x1
jax: 0.10.0
libtpu: 0.0.40
codegen_flags: <defaults>
</compile_context>

<pallas_src>
import math

import numpy as np
import jax
import jax.numpy as jnp
from jax.experimental import pallas as pl
from jax.experimental.pallas import tpu as pltpu

LANE = 128


def _round_up(n, m):
    return ((n + m - 1) // m) * m


# -----------------------------------------------------------------------------
# Static model configuration (mirrors CNNModel.__init__, seq_len fixed at 25)
# -----------------------------------------------------------------------------
def build_cfg(input_channels, cnn_channels, kernel_size, pool_every):
    cfg = []
    in_c = input_channels
    seq_len = 25
    layer_idx = 0
    for out_c in cnn_channels:
        layer_idx += 1
        pool = (pool_every > 0) and (layer_idx % pool_every == 0) and (seq_len > 1)
        l_in = seq_len
        l_out = int(math.ceil(seq_len / 2)) if pool else seq_len
        cfg.append(dict(cin=in_c, cout=out_c, K=kernel_size,
                        L_in=l_in, pool=pool, L_out=l_out))
        in_c = out_c
        seq_len = l_out
    conv_output_size = in_c * seq_len
    return cfg, conv_output_size


# -----------------------------------------------------------------------------
# Wrapper-side parameter packing (all constants built once, outside the kernel)
# -----------------------------------------------------------------------------
def pack_inputs(x, params, cfg, output_size, mm_dtype=jnp.float32):
    """Returns (x_cm, operands, plan).

    Activations live as (B, width) with channel-major lanes (lane = c*L + t),
    i.e. PyTorch's .view(B, -1) flatten order of the NCL tensor; the initial
    x.permute(0, 2, 1) is absorbed here.  Every width is padded to a multiple
    of 128 lanes with zero columns (zero rows on the next layer's weights), so
    all in-kernel slices are lane-tile aligned.
    """
    B = x.shape[0]
    C0, L0 = cfg[0]["cin"], cfg[0]["L_in"]
    in_width = _round_up(C0 * L0, LANE)
    x_cm = jnp.transpose(x, (0, 2, 1)).reshape(B, C0 * L0).astype(jnp.float32)
    x_cm = jnp.pad(x_cm, ((0, 0), (0, in_width - C0 * L0)))

    operands = []       # alternating (weight, bias) per conv layer, then (fc_w, fc_b)
    layer_plan = []

    for (w, b), lc in zip(params["conv"], cfg):
        cin, cout, K, L, L_out, pool = (lc["cin"], lc["cout"], lc["K"],
                                        lc["L_in"], lc["L_out"], lc["pool"])
        pad = K // 2
        w_np = np.asarray(w, np.float32)
        b_np = np.asarray(b, np.float32)

        # Toeplitz-expanded conv weights: T[c*L + (t+k-pad), o*L + t] = w[o, c, k]
        # so (B, width_in) @ T == Conv1d(padding=K//2) in channel-major lanes.
        # Rows >= cin*L (lane padding of the previous layer) stay zero.
        o_i, c_i, k_i, t_i = (a.reshape(-1) for a in np.meshgrid(
            np.arange(cout), np.arange(cin), np.arange(K), np.arange(L),
            indexing="ij"))
        t_src = t_i + k_i - pad
        valid = (t_src >= 0) & (t_src < L)
        o_i, c_i, k_i, t_i, t_src = (a[valid] for a in (o_i, c_i, k_i, t_i, t_src))
        T = np.zeros((in_width, cout * L), np.float32)
        T[c_i * L + t_src, o_i * L + t_i] = w_np[o_i, c_i, k_i]
        bias_rep = np.repeat(b_np, L)[None, :]                 # lane = c*L + t

        if pool:
            # MaxPool1d(2, ceil_mode=True): fold the even|odd selection matrix S
            # into T and bias (exact: each S column has <= one 1, ReLU(0) = 0,
            # and the pool always follows a ReLU so the missing odd element of
            # the ceil-mode last window selects 0 == max identity).
            half = cout * L_out
            half_pad = _round_up(half, LANE)
            S = np.zeros((cout * L, 2 * half_pad), np.float32)
            for o in range(cout):
                for j in range(L_out):
                    S[o * L + 2 * j, o * L_out + j] = 1.0
                    if 2 * j + 1 < L:
                        S[o * L + 2 * j + 1, half_pad + o * L_out + j] = 1.0
            W_layer = T @ S                                    # (in_width, 2*half_pad)
            b_layer = bias_rep @ S                             # (1, 2*half_pad)
            next_width = half_pad
        else:
            half_pad = 0
            out_width = _round_up(cout * L, LANE)
            W_layer = np.zeros((in_width, out_width), np.float32)
            W_layer[:, :cout * L] = T
            b_layer = np.zeros((1, out_width), np.float32)
            b_layer[:, :cout * L] = bias_rep
            next_width = out_width

        layer_plan.append(dict(pool=pool, half_pad=half_pad))
        operands.append(jnp.asarray(W_layer, dtype=mm_dtype))
        operands.append(jnp.asarray(b_layer, dtype=jnp.float32))
        in_width = next_width

    # Final Linear: activation lanes are already in PyTorch flatten order
    # (c*Lf + t); pad output lanes to 128 so the store is lane-dense.
    wfc, bfc = params["fc"]
    wfc_np = np.asarray(wfc, np.float32)
    cf_lf = wfc_np.shape[1]
    out_pad = _round_up(output_size, LANE)
    W_fc = np.zeros((in_width, out_pad), np.float32)
    W_fc[:cf_lf, :output_size] = wfc_np.T
    b_fc = np.zeros((1, out_pad), np.float32)
    b_fc[:, :output_size] = np.asarray(bfc, np.float32)
    operands.append(jnp.asarray(W_fc, dtype=mm_dtype))
    operands.append(jnp.asarray(b_fc, dtype=jnp.float32))

    plan = dict(layers=layer_plan, mm_dtype=mm_dtype, out_pad=out_pad)
    return x_cm, operands, plan


# -----------------------------------------------------------------------------
# Pallas kernel: per conv layer ONE batch-fused MXU matmul (conv + pool select
# pre-folded) + bias + ReLU (+ lane-aligned VPU max for the pool), then one FC
# matmul and a single dense (tb, 128) store.  Dropout is identity at inference.
# -----------------------------------------------------------------------------
def build_cnn_kernel(plan):
    mm_dtype = plan["mm_dtype"]

    def kernel(*refs):
        # refs = (x_ref, w1, b1, w2, b2, ..., w_fc, b_fc, out_ref)
        x_ref = refs[0]
        out_ref = refs[-1]

        h = x_ref[...]                                         # (tb, width0) f32
        i = 1
        for layer in plan["layers"]:
            w = refs[i][...]
            b = refs[i + 1][...]                               # (1, width) f32
            i += 2
            y = jnp.dot(h.astype(mm_dtype), w,
                        preferred_element_type=jnp.float32)    # conv (+ pool select)
            y = jnp.maximum(y + b, 0.0)                        # bias + ReLU (f32 VPU)
            if layer["pool"]:
                half = layer["half_pad"]                       # multiple of 128
                y = jnp.maximum(y[:, :half], y[:, half:])      # max(even, odd)
            h = y

        w = refs[i][...]
        b = refs[i + 1][...]
        out = jnp.dot(h.astype(mm_dtype), w,
                      preferred_element_type=jnp.float32)      # FC
        out_ref[...] = out + b                                 # single dense store

    return kernel


# -----------------------------------------------------------------------------
# Wrapper: pallas_call with an optional parallel batch grid
# -----------------------------------------------------------------------------
def _pick_batch_tile(B):
    # Large batches: big tiles (per-step overhead ~0.35 us) and >= 2 grid steps
    # so v7x can shard across both TensorCores.  Small B: one block.
    for tb in (1024, 512, 256, 128):
        if B > tb and B % tb == 0:
            return tb
    return B


def cnn_model_forward(x, params, cfg, output_size, use_bf16_matmul=False):
    """x: (B, seq_len=25, input_channels) -- same as CNNModel.forward input."""
    mm_dtype = jnp.bfloat16 if use_bf16_matmul else jnp.float32
    x_cm, operands, plan = pack_inputs(x, params, cfg, output_size, mm_dtype)
    B, width0 = x_cm.shape
    out_pad = plan["out_pad"]

    tb = _pick_batch_tile(B)
    grid = (B // tb,)

    in_specs = [pl.BlockSpec((tb, width0), lambda i: (i, 0))]
    for op in operands:
        # Grid-invariant weights/biases: block index (0,0) every step, so they
        # are DMA'd once and stay resident across the batch grid.
        in_specs.append(pl.BlockSpec(op.shape, lambda i: (0, 0)))

    out_padded = pl.pallas_call(
        build_cnn_kernel(plan),
        out_shape=jax.ShapeDtypeStruct((B, out_pad), jnp.float32),
        grid=grid,
        in_specs=in_specs,
        out_specs=pl.BlockSpec((tb, out_pad), lambda i: (i, 0)),
        compiler_params=pltpu.CompilerParams(dimension_semantics=("parallel",)),
    )(x_cm, *operands)

    return out_padded[:, :output_size]


# -----------------------------------------------------------------------------
# Pure-JAX reference (for validation only)
# -----------------------------------------------------------------------------
def reference_forward(x, params, cfg, output_size):
    h = jnp.transpose(x, (0, 2, 1)).astype(jnp.float32)
    for (w, b), lc in zip(params["conv"], cfg):
        pad = lc["K"] // 2
        h = jax.lax.conv_general_dilated(
            h, w, window_strides=(1,), padding=[(pad, pad)],
            dimension_numbers=("NCH", "OIH", "NCH"),
            precision=jax.lax.Precision.HIGHEST)
        h = h + b[None, :, None]
        h = jnp.maximum(h, 0.0)
        if lc["pool"]:
            L = h.shape[2]
            pad_r = 2 * lc["L_out"] - L
            h = jax.lax.reduce_window(
                h, -jnp.inf, jax.lax.max,
                window_dimensions=(1, 1, 2), window_strides=(1, 1, 2),
                padding=[(0, 0), (0, 0), (0, pad_r)])
    flat = h.reshape(h.shape[0], -1)
    wfc, bfc = params["fc"]
    return jnp.dot(flat, wfc.T, precision=jax.lax.Precision.HIGHEST) + bfc[None, :]


# -----------------------------------------------------------------------------
# Main
# -----------------------------------------------------------------------------
if __name__ == "__main__":
    # Small, module-consistent hyperparameters.
    batch = 2
    input_channels = 3            # e.g. (x, y, z) per joint
    seq_len = 25                  # fixed inside CNNModel.__init__ (25 joints)
    cnn_channels = (8, 16)
    kernel_size = 3
    dropout = 0.1                 # identity at inference
    pool_every = 1
    output_size = 32

    assert kernel_size % 2 == 1, "CNNModel's same-padding conv assumes odd kernel_size"
    cfg, conv_output_size = build_cfg(input_channels, cnn_channels,
                                      kernel_size, pool_every)

    # Deterministic parameter init (synthetic weights, no checkpoint load).
    key = jax.random.PRNGKey(0)
    params = {"conv": [], "fc": None}
    for lc in cfg:
        key, kw, kb = jax.random.split(key, 3)
        w = 0.2 * jax.random.normal(kw, (lc["cout"], lc["cin"], lc["K"]), jnp.float32)
        b = 0.1 * jax.random.normal(kb, (lc["cout"],), jnp.float32)
        params["conv"].append((w, b))
    key, kw, kb, kx = jax.random.split(key, 4)
    wfc = 0.05 * jax.random.normal(kw, (output_size, conv_output_size), jnp.float32)
    bfc = 0.1 * jax.random.normal(kb, (output_size,), jnp.float32)
    params["fc"] = (wfc, bfc)

    # Example input: (batch, seq_len=25, input_channels), like the PyTorch module.
    x = jax.random.normal(kx, (batch, seq_len, input_channels), jnp.float32)

    ref = reference_forward(x, params, cfg, output_size)

    # f32 path (default, validated at 5e-3).
    out = cnn_model_forward(x, params, cfg, output_size)
    out = jax.block_until_ready(out)
    assert out.shape == (batch, output_size), out.shape
    if not np.allclose(np.asarray(out), np.asarray(ref), atol=5e-3, rtol=5e-3):
        raise AssertionError("Pallas kernel (f32) output does not match JAX reference")

    # Optional bf16-input MXU path (v6e/v7x throughput); f32 accumulation,
    # f32 bias/ReLU/max.  Looser tolerance since inputs are rounded to bf16.
    out_bf16 = cnn_model_forward(x, params, cfg, output_size, use_bf16_matmul=True)
    out_bf16 = jax.block_until_ready(out_bf16)
    if not np.allclose(np.asarray(out_bf16), np.asarray(ref), atol=2e-2, rtol=2e-2):
        raise AssertionError("Pallas kernel (bf16 matmul) output does not match JAX reference")

    print("KERNEL_OK")
</pallas_src>

<mosaic_0001>
module attributes {stable_mosaic.version = 11 : i64} {
  func.func @kernel(%arg0: i32, %arg1: memref<2x128xf32, #tpu.memory_space<vmem>>, %arg2: memref<128x256xf32, #tpu.memory_space<vmem>>, %arg3: memref<1x256xf32, #tpu.memory_space<vmem>>, %arg4: memref<128x256xf32, #tpu.memory_space<vmem>>, %arg5: memref<1x256xf32, #tpu.memory_space<vmem>>, %arg6: memref<128x128xf32, #tpu.memory_space<vmem>>, %arg7: memref<1x128xf32, #tpu.memory_space<vmem>>, %arg8: memref<2x128xf32, #tpu.memory_space<vmem>>) attributes {dimension_semantics = [#tpu.dimension_semantics<parallel>], iteration_bounds = array<i64: 1>, scalar_prefetch = 0 : i64, scratch_operands = 0 : i64, tpu.core_type = #tpu.core_type<tc>, window_params = [{transform_indices = @transform_0, window_bounds = array<i64: 2, 128>}, {pipeline_mode = #tpu.pipeline_mode<synchronous>, transform_indices = @transform_1, window_bounds = array<i64: 128, 256>}, {pipeline_mode = #tpu.pipeline_mode<synchronous>, transform_indices = @transform_2, window_bounds = array<i64: 1, 256>}, {pipeline_mode = #tpu.pipeline_mode<synchronous>, transform_indices = @transform_3, window_bounds = array<i64: 128, 256>}, {pipeline_mode = #tpu.pipeline_mode<synchronous>, transform_indices = @transform_4, window_bounds = array<i64: 1, 256>}, {pipeline_mode = #tpu.pipeline_mode<synchronous>, transform_indices = @transform_5, window_bounds = array<i64: 128, 128>}, {pipeline_mode = #tpu.pipeline_mode<synchronous>, transform_indices = @transform_6, window_bounds = array<i64: 1, 128>}, {transform_indices = @transform_7, window_bounds = array<i64: 2, 128>}]} {
    %c0 = arith.constant 0 : index
    %c0_0 = arith.constant 0 : index
    %0 = vector.load %arg1[%c0, %c0_0] : memref<2x128xf32, #tpu.memory_space<vmem>>, vector<2x128xf32>
    %c0_1 = arith.constant 0 : index
    %c0_2 = arith.constant 0 : index
    %1 = vector.load %arg2[%c0_1, %c0_2] : memref<128x256xf32, #tpu.memory_space<vmem>>, vector<128x256xf32>
    %c0_3 = arith.constant 0 : index
    %c0_4 = arith.constant 0 : index
    %2 = vector.load %arg3[%c0_3, %c0_4] : memref<1x256xf32, #tpu.memory_space<vmem>>, vector<1x256xf32>
    %cst = arith.constant dense<0.000000e+00> : vector<2x256xf32>
    %3 = tpu.matmul %0, %1, %cst {dimension_numbers = #tpu.dot_dimension_numbers<[1], [0], [0], [1], [0, 0, 1, 1], [], []>} : vector<2x128xf32>, vector<128x256xf32>, vector<2x256xf32> -> vector<2x256xf32>
    %4 = vector.broadcast %2 : vector<1x256xf32> to vector<2x256xf32>
    %5 = arith.addf %3, %4 : vector<2x256xf32>
    %cst_5 = arith.constant 0.000000e+00 : f32
    %6 = vector.broadcast %cst_5 : f32 to vector<2x256xf32>
    %7 = arith.maximumf %5, %6 : vector<2x256xf32>
    %8 = vector.extract_strided_slice %7 {offsets = [0, 0], sizes = [2, 128], strides = [1, 1]} : vector<2x256xf32> to vector<2x128xf32>
    %9 = vector.extract_strided_slice %7 {offsets = [0, 128], sizes = [2, 128], strides = [1, 1]} : vector<2x256xf32> to vector<2x128xf32>
    %10 = arith.maximumf %8, %9 : vector<2x128xf32>
    %c0_6 = arith.constant 0 : index
    %c0_7 = arith.constant 0 : index
    %11 = vector.load %arg4[%c0_6, %c0_7] : memref<128x256xf32, #tpu.memory_space<vmem>>, vector<128x256xf32>
    %c0_8 = arith.constant 0 : index
    %c0_9 = arith.constant 0 : index
    %12 = vector.load %arg5[%c0_8, %c0_9] : memref<1x256xf32, #tpu.memory_space<vmem>>, vector<1x256xf32>
    %cst_10 = arith.constant dense<0.000000e+00> : vector<2x256xf32>
    %13 = tpu.matmul %10, %11, %cst_10 {dimension_numbers = #tpu.dot_dimension_numbers<[1], [0], [0], [1], [0, 0, 1, 1], [], []>} : vector<2x128xf32>, vector<128x256xf32>, vector<2x256xf32> -> vector<2x256xf32>
    %14 = vector.broadcast %12 : vector<1x256xf32> to vector<2x256xf32>
    %15 = arith.addf %13, %14 : vector<2x256xf32>
    %cst_11 = arith.constant 0.000000e+00 : f32
    %16 = vector.broadcast %cst_11 : f32 to vector<2x256xf32>
    %17 = arith.maximumf %15, %16 : vector<2x256xf32>
    %18 = vector.extract_strided_slice %17 {offsets = [0, 0], sizes = [2, 128], strides = [1, 1]} : vector<2x256xf32> to vector<2x128xf32>
    %19 = vector.extract_strided_slice %17 {offsets = [0, 128], sizes = [2, 128], strides = [1, 1]} : vector<2x256xf32> to vector<2x128xf32>
    %20 = arith.maximumf %18, %19 : vector<2x128xf32>
    %c0_12 = arith.constant 0 : index
    %c0_13 = arith.constant 0 : index
    %21 = vector.load %arg6[%c0_12, %c0_13] : memref<128x128xf32, #tpu.memory_space<vmem>>, vector<128x128xf32>
    %c0_14 = arith.constant 0 : index
    %c0_15 = arith.constant 0 : index
    %22 = vector.load %arg7[%c0_14, %c0_15] : memref<1x128xf32, #tpu.memory_space<vmem>>, vector<1x128xf32>
    %cst_16 = arith.constant dense<0.000000e+00> : vector<2x128xf32>
    %23 = tpu.matmul %20, %21, %cst_16 {dimension_numbers = #tpu.dot_dimension_numbers<[1], [0], [0], [1], [0, 0, 1, 1], [], []>} : vector<2x128xf32>, vector<128x128xf32>, vector<2x128xf32> -> vector<2x128xf32>
    %24 = vector.broadcast %22 : vector<1x128xf32> to vector<2x128xf32>
    %25 = arith.addf %23, %24 : vector<2x128xf32>
    %c0_17 = arith.constant 0 : index
    %c0_18 = arith.constant 0 : index
    %26 = vector.load %arg8[%c0_17, %c0_18] : memref<2x128xf32, #tpu.memory_space<vmem>>, vector<2x128xf32>
    tpu.vector_store %arg8[%c0_17, %c0_18], %25 {strides = array<i32>} : memref<2x128xf32, #tpu.memory_space<vmem>>, vector<2x128xf32>,
    return
  }
  func.func @transform_0(%arg0: i32) -> (i32, i32) {
    %c0_i32 = arith.constant 0 : i32
    %c0_i32_0 = arith.constant 0 : i32
    return %arg0, %c0_i32 : i32, i32
  }
  func.func @transform_1(%arg0: i32) -> (i32, i32) {
    %c0_i32 = arith.constant 0 : i32
    %c0_i32_0 = arith.constant 0 : i32
    %c0_i32_1 = arith.constant 0 : i32
    return %c0_i32, %c0_i32_0 : i32, i32
  }
  func.func @transform_2(%arg0: i32) -> (i32, i32) {
    %c0_i32 = arith.constant 0 : i32
    %c0_i32_0 = arith.constant 0 : i32
    %c0_i32_1 = arith.constant 0 : i32
    return %c0_i32, %c0_i32_0 : i32, i32
  }
  func.func @transform_3(%arg0: i32) -> (i32, i32) {
    %c0_i32 = arith.constant 0 : i32
    %c0_i32_0 = arith.constant 0 : i32
    %c0_i32_1 = arith.constant 0 : i32
    return %c0_i32, %c0_i32_0 : i32, i32
  }
  func.func @transform_4(%arg0: i32) -> (i32, i32) {
    %c0_i32 = arith.constant 0 : i32
    %c0_i32_0 = arith.constant 0 : i32
    %c0_i32_1 = arith.constant 0 : i32
    return %c0_i32, %c0_i32_0 : i32, i32
  }
  func.func @transform_5(%arg0: i32) -> (i32, i32) {
    %c0_i32 = arith.constant 0 : i32
    %c0_i32_0 = arith.constant 0 : i32
    %c0_i32_1 = arith.constant 0 : i32
    return %c0_i32, %c0_i32_0 : i32, i32
  }
  func.func @transform_6(%arg0: i32) -> (i32, i32) {
    %c0_i32 = arith.constant 0 : i32
    %c0_i32_0 = arith.constant 0 : i32
    %c0_i32_1 = arith.constant 0 : i32
    return %c0_i32, %c0_i32_0 : i32, i32
  }
  func.func @transform_7(%arg0: i32) -> (i32, i32) {
    %c0_i32 = arith.constant 0 : i32
    %c0_i32_0 = arith.constant 0 : i32
    return %arg0, %c0_i32 : i32, i32
  }
}

</mosaic_0001>

<bundles_post_ra>
// kernel: tpu_custom_call.1
= control target key start
LH: loop header
LB: loop body
LE: loop exit
PB: predicated region body
PF: predicated region fallthrough
CT: control target
= control target key end

     0   :  { %12 = vsyncpa [#allocation3], 0  ;;  %s694_s0 = inlined_call_operand.hbm [shape: f32[2,128], index: 0, kind: input, shape index: {}]   ;;  %s695_s1 = inlined_call_operand.hbm [shape: f32[128,256], index: 1, kind: input, shape index: {}]   ;;  %s696_s2 = inlined_call_operand.vmem [shape: f32[1,256], index: 2, kind: input, shape index: {}]   ;;  %s697_s3 = inlined_call_operand.hbm [shape: f32[128,256], index: 3, kind: input, shape index: {}]   ;;  %s698_s4 = inlined_call_operand.vmem [shape: f32[1,256], index: 4, kind: input, shape index: {}]   ;;  %s699_s5 = inlined_call_operand.hbm [shape: f32[128,128], index: 5, kind: input, shape index: {}]   ;;  %s700_s6 = inlined_call_operand.vmem [shape: f32[1,128], index: 6, kind: input, shape index: {}]   ;;  %s701_s7 = inlined_call_operand.hbm [shape: f32[2,128], index: 7, kind: output, shape index: {}]  }
   0x1   :  { %13 = vsyncpa [#allocation6], 0 }
   0x2   :  { %14 = vsyncpa [#allocation9], 0 }
   0x3   :  { %15 = vsyncpa [#allocation4], 0  ;;  %s600_s24 = smov [#allocation5]  }
   0x4   :  { %s31_s25 = sshll.u32 %s600_s24, 4  ;;  %s32_s25 = int_to_ptr.vmem [resolvable:$true] %s31_s25 }
   0x5   :  { %s500_s26 = scalar_lea.vmem %s32_s25, 4096  ;;  %p505_p1 = scmp.lt.s32.totalorder %s32_s25, %s32_s25 }
   0x6   :  { %p501_p0 = scmp.ne.s32.totalorder %s32_s25, %s500_s26  ;;  %p506_p2 = scmp.lt.s32.totalorder %s500_s26, %s500_s26 }
   0x8   :  { %p507_p3 = por %p506_p2, %p505_p1 }
   0xa   :  { %p508_p4 = pnand %p507_p3, %p501_p0 }
   0xc   :  { %511 = shalt.err (!%p508_p4)
}
   0xd   :  { %s601_s27 = smov 256   ;;  %s602_s28 = smov 16  }
   0xe   :  { %37 = dma.hbm_to_vmem [thread:$0]  %s695_s1, 4096, %s32_s25, [#allocation6], %s601_s27, %s601_s27, %s602_s28  }
   0xf   :  { %s603_s8 = smov [#allocation2]   ;;  %s604_s10 = smov [#allocation7]  }
  0x10   :  { %s22_s9 = sshll.u32 %s603_s8, 4  ;;  %s45_s11 = sshll.u32 %s604_s10, 4  ;;  %s23_s9 = int_to_ptr.vmem [resolvable:$true] %s22_s9  ;;  %s46_s11 = int_to_ptr.vmem [resolvable:$true] %s45_s11 }
  0x11   :  { %s520_s12 = scalar_lea.vmem %s23_s9, 32  ;;  %p525_p6 = scmp.lt.s32.totalorder %s23_s9, %s23_s9 }
  0x12   :  { %p521_p5 = scmp.ne.s32.totalorder %s23_s9, %s520_s12  ;;  %p526_p7 = scmp.lt.s32.totalorder %s520_s12, %s520_s12 }
  0x14   :  { %p527_p8 = por %p526_p7, %p525_p6 }
  0x16   :  { %p528_p9 = pnand %p527_p8, %p521_p5 }
  0x18   :  { %531 = shalt.err (!%p528_p9)
}
  0x19   :  { %25 = dma.hbm_to_vmem [thread:$0]  %s694_s0, 32, %s23_s9, [#allocation3]  }
  0x1a   :  { %s540_s15 = scalar_lea.vmem %s46_s11, 4096  ;;  %p545_p11 = scmp.lt.s32.totalorder %s46_s11, %s46_s11 }
  0x1b   :  { %p541_p10 = scmp.ne.s32.totalorder %s46_s11, %s540_s15  ;;  %p546_p12 = scmp.lt.s32.totalorder %s540_s15, %s540_s15 }
  0x1d   :  { %p547_p13 = por %p546_p12, %p545_p11 }
  0x1f   :  { %p548_p0 = pnand %p547_p13, %p541_p10 }
  0x21   :  { %551 = shalt.err (!%p548_p0)
}
  0x22   :  { %51 = dma.hbm_to_vmem [thread:$0]  %s697_s3, 4096, %s46_s11, [#allocation6], %s601_s27, %s601_s27, %s602_s28  }
  0x23   :  { %s605_s17 = smov [#allocation8]  }
  0x24   :  { %s59_s18 = sshll.u32 %s605_s17, 4  ;;  %s60_s18 = int_to_ptr.vmem [resolvable:$true] %s59_s18 }
  0x25   :  { %s560_s19 = scalar_lea.vmem %s60_s18, 2048  ;;  %p565_p2 = scmp.lt.s32.totalorder %s60_s18, %s60_s18 }
  0x26   :  { %p561_p1 = scmp.ne.s32.totalorder %s60_s18, %s560_s19  ;;  %p566_p3 = scmp.lt.s32.totalorder %s560_s19, %s560_s19 }
  0x28   :  { %p567_p4 = por %p566_p3, %p565_p2 }
  0x2a   :  { %p568_p5 = pnand %p567_p4, %p561_p1 }
  0x2c   :  { %571 = shalt.err (!%p568_p5)
}
  0x2d   :  { %s606_s0 = smov 128   ;;  %s607_s20 = smov 8  }
  0x2e   :  { %65 = dma.hbm_to_vmem [thread:$0]  %s699_s5, 2048, %s60_s18, [#allocation9], %s606_s0, %s606_s0, %s607_s20  }
  0x2f   :  { %592 = dma.done.wait [#allocation3], 32  }
  0x30   :  { %593 = vsyncadd [#allocation3], 4294967264 }
  0x31   :  { %594 = dma.done.wait [#allocation6], 8192  }
  0x32   :  { %595 = vsyncadd [#allocation6], 4294959104 }
  0x33   :  { %596 = dma.done.wait [#allocation9], 2048  }
  0x34   :  { %597 = vsyncadd [#allocation9], 4294965248  ;;  %v608_v0 = vmov 0.0   ;;  %v112_v1 = vld [vmem:[#allocation5 + $0xf8] sm:$0xff]  ;;  %v111_v2 = vld [vmem:[#allocation5 + $0xf0] sm:$0xff]  ;;  %vm609_vm0 = vmmov 0  }
  0x35   :  { %189 = vmatprep.mubr.f32.mxu0 %v608_v0  ;;  %307 = vmatprep.mubr.f32.mxu1 %v608_v0  ;;  %v110_v3 = vld [vmem:[#allocation5 + $0xe8] sm:$0xff]  ;;  %v109_v4 = vld [vmem:[#allocation5 + $0xe0] sm:$0xff]  ;;  %v108_v5 = vld [vmem:[#allocation5 + $0xd8] sm:$0xff]  ;;  %s610_s26 = smov [#allocation10]  }
  0x36   :  { %125 = vmatprep.subr.mxu0 %v112_v1  ;;  %v107_v6 = vld [vmem:[#allocation5 + $0xd0] sm:$0xff]  ;;  %v106_v7 = vld [vmem:[#allocation5 + $0xc8] sm:$0xff]  ;;  %v105_v8 = vld [vmem:[#allocation5 + $0xc0] sm:$0xff]  ;;  %s417_s27 = sshll.u32 %s610_s26, 4  ;;  %s418_s27 = int_to_ptr.vmem [resolvable:$true] %s417_s27 }
  0x37   :  { %126 = vmatpush1.msra.mxu0 %v111_v2  ;;  %v104_v9 = vld [vmem:[#allocation5 + $0xb8] sm:$0xff]  ;;  %v103_v10 = vld [vmem:[#allocation5 + $0xb0] sm:$0xff]  ;;  %v102_v11 = vld [vmem:[#allocation5 + $0xa8] sm:$0xff]  ;;  %p577_p7 = scmp.lt.s32.totalorder %s418_s27, %s418_s27 }
  0x38   :  { %127 = vmatprep.subr.mxu0 %v110_v3  ;;  %v101_v12 = vld [vmem:[#allocation5 + $0xa0] sm:$0xff]  ;;  %v100_v13 = vld [vmem:[#allocation5 + $0x98] sm:$0xff]  ;;  %v99_v14 = vld [vmem:[#allocation5 + $0x90] sm:$0xff] }
  0x39   :  { %128 = vmatpush1.msra.mxu0 %v109_v4  ;;  %v230_v15 = vld [vmem:[#allocation7 + $0xf8] sm:$0xff]  ;;  %v229_v16 = vld [vmem:[#allocation7 + $0xf0] sm:$0xff]  ;;  %v228_v17 = vld [vmem:[#allocation7 + $0xe8] sm:$0xff] }
  0x3a   :  { %129 = vmatprep.subr.mxu0 %v108_v5  ;;  %v98_v18 = vld [vmem:[#allocation5 + $0x88] sm:$0xff]  ;;  %243 = vmatprep.subr.mxu1 %v230_v15  ;;  %v227_v19 = vld [vmem:[#allocation7 + $0xe0] sm:$0xff]  ;;  %v226_v21 = vld [vmem:[#allocation7 + $0xd8] sm:$0xff] }
  0x3b   :  { %130 = vmatpush1.msra.mxu0 %v107_v6  ;;  %v97_v20 = vld [vmem:[#allocation5 + $0x80] sm:$0xff]  ;;  %244 = vmatpush1.msra.mxu1 %v229_v16  ;;  %v96_v22 = vld [vmem:[#allocation5 + $0x78] sm:$0xff]  ;;  %v225_v23 = vld [vmem:[#allocation7 + $0xd0] sm:$0xff] }
  0x3c   :  { %131 = vmatprep.subr.mxu0 %v106_v7  ;;  %245 = vmatprep.subr.mxu1 %v228_v17  ;;  %v95_v24 = vld [vmem:[#allocation5 + $0x70] sm:$0xff]  ;;  %v224_v25 = vld [vmem:[#allocation7 + $0xc8] sm:$0xff]  ;;  %v223_v27 = vld [vmem:[#allocation7 + $0xc0] sm:$0xff] }
  0x3d   :  { %132 = vmatpush1.msra.mxu0 %v105_v8  ;;  %246 = vmatpush1.msra.mxu1 %v227_v19  ;;  %v94_v26 = vld [vmem:[#allocation5 + $0x68] sm:$0xff]  ;;  %v93_v28 = vld [vmem:[#allocation5 + $0x60] sm:$0xff]  ;;  %v222_v29 = vld [vmem:[#allocation7 + $0xb8] sm:$0xff] }
  0x3e   :  { %133 = vmatprep.subr.mxu0 %v104_v9  ;;  %247 = vmatprep.subr.mxu1 %v226_v21  ;;  %v92_v30 = vld [vmem:[#allocation5 + $0x58] sm:$0xff]  ;;  %v221_v31 = vld [vmem:[#allocation7 + $0xb0] sm:$0xff]  ;;  %v220_v33 = vld [vmem:[#allocation7 + $0xa8] sm:$0xff] }
  0x3f   :  { %134 = vmatpush1.msra.mxu0 %v103_v10  ;;  %248 = vmatpush1.msra.mxu1 %v225_v23  ;;  %v91_v32 = vld [vmem:[#allocation5 + $0x50] sm:$0xff]  ;;  %v90_v34 = vld [vmem:[#allocation5 + $0x48] sm:$0xff]  ;;  %v219_v35 = vld [vmem:[#allocation7 + $0xa0] sm:$0xff] }
  0x40   :  { %135 = vmatprep.subr.mxu0 %v102_v11  ;;  %249 = vmatprep.subr.mxu1 %v224_v25  ;;  %v89_v36 = vld [vmem:[#allocation5 + $0x40] sm:$0xff]  ;;  %v218_v37 = vld [vmem:[#allocation7 + $0x98] sm:$0xff]  ;;  %v217_v39 = vld [vmem:[#allocation7 + $0x90] sm:$0xff] }
  0x41   :  { %136 = vmatpush1.msra.mxu0 %v101_v12  ;;  %250 = vmatpush1.msra.mxu1 %v223_v27  ;;  %v88_v38 = vld [vmem:[#allocation5 + $0x38] sm:$0xff]  ;;  %v87_v40 = vld [vmem:[#allocation5 + $0x30] sm:$0xff]  ;;  %v216_v41 = vld [vmem:[#allocation7 + $0x88] sm:$0xff] }
  0x42   :  { %137 = vmatprep.subr.mxu0 %v100_v13  ;;  %251 = vmatprep.subr.mxu1 %v222_v29  ;;  %v86_v42 = vld [vmem:[#allocation5 + $0x28] sm:$0xff]  ;;  %v215_v43 = vld [vmem:[#allocation7 + $0x80] sm:$0xff]  ;;  %v214_v45 = vld [vmem:[#allocation7 + $0x78] sm:$0xff] }
  0x43   :  { %138 = vmatpush1.msra.mxu0 %v99_v14  ;;  %252 = vmatpush1.msra.mxu1 %v221_v31  ;;  %v85_v44 = vld [vmem:[#allocation5 + $0x20] sm:$0xff]  ;;  %v84_v46 = vld [vmem:[#allocation5 + $0x18] sm:$0xff]  ;;  %v213_v47 = vld [vmem:[#allocation7 + $0x70] sm:$0xff]  ;;  %v115_v14 = vlaneseq }
  0x44   :  { %139 = vmatprep.subr.mxu0 %v98_v18  ;;  %253 = vmatprep.subr.mxu1 %v220_v33  ;;  %v83_v48 = vld [vmem:[#allocation5 + $0x10] sm:$0xff]  ;;  %v212_v49 = vld [vmem:[#allocation7 + $0x68] sm:$0xff]  ;;  %v211_v51 = vld [vmem:[#allocation7 + $0x60] sm:$0xff] }
  0x45   :  { %140 = vmatpush1.msra.mxu0 %v97_v20  ;;  %254 = vmatpush1.msra.mxu1 %v219_v35  ;;  %v82_v50 = vld [vmem:[#allocation5 + $0x8] sm:$0xff]  ;;  %v81_v52 = vld [vmem:[#allocation5] sm:$0xff]  ;;  %v210_v53 = vld [vmem:[#allocation7 + $0x58] sm:$0xff]  ;;  %v116_v15 = vshrl.u32 %v115_v14, 7 }
  0x46   :  { %141 = vmatprep.subr.mxu0 %v96_v22  ;;  %255 = vmatprep.subr.mxu1 %v218_v37  ;;  %v80_v54 = vld [vmem:[#allocation2] sm:$0x3]  ;;  %v209_v55 = vld [vmem:[#allocation7 + $0x50] sm:$0xff]  ;;  %v208_v56 = vld [vmem:[#allocation7 + $0x48] sm:$0xff] }
  0x47   :  { %142 = vmatpush1.msra.mxu0 %v95_v24  ;;  %256 = vmatpush1.msra.mxu1 %v217_v39  ;;  %v207_v57 = vld [vmem:[#allocation7 + $0x40] sm:$0xff]  ;;  %v206_v58 = vld [vmem:[#allocation7 + $0x38] sm:$0xff]  ;;  %v205_v59 = vld [vmem:[#allocation7 + $0x30] sm:$0xff]  ;;  %v117_v16 = vsub.s32 0, %v116_v15  ;;  %v121_v18 = vsub.s32 1, %v116_v15 }
  0x48   :  { %143 = vmatprep.subr.mxu0 %v94_v26  ;;  %257 = vmatprep.subr.mxu1 %v216_v41  ;;  %v204_v60 = vld [vmem:[#allocation7 + $0x28] sm:$0xff]  ;;  %v203_v61 = vld [vmem:[#allocation7 + $0x20] sm:$0xff]  ;;  %v202_v62 = vld [vmem:[#allocation7 + $0x18] sm:$0xff] }
  0x49   :  { %144 = vmatpush1.msra.mxu0 %v93_v28  ;;  %258 = vmatpush1.msra.mxu1 %v215_v43  ;;  %v201_v63 = vld [vmem:[#allocation7 + $0x10] sm:$0xff]  ;;  %v200_v1 = vld [vmem:[#allocation7 + $0x8] sm:$0xff]  ;;  %v199_v2 = vld [vmem:[#allocation7] sm:$0xff] }
  0x4a   :  { %145 = vmatprep.subr.mxu0 %v92_v30  ;;  %259 = vmatprep.subr.mxu1 %v214_v45  ;;  %v332_v3 = vld [vmem:[#allocation8 + $0x78] sm:$0xff]  ;;  %v331_v4 = vld [vmem:[#allocation8 + $0x70] sm:$0xff]  ;;  %v330_v5 = vld [vmem:[#allocation8 + $0x68] sm:$0xff] }
  0x4b   :  { %146 = vmatpush1.msra.mxu0 %v91_v32  ;;  %260 = vmatpush1.msra.mxu1 %v213_v47  ;;  %v329_v6 = vld [vmem:[#allocation8 + $0x60] sm:$0xff]  ;;  %v328_v7 = vld [vmem:[#allocation8 + $0x58] sm:$0xff]  ;;  %v327_v8 = vld [vmem:[#allocation8 + $0x50] sm:$0xff] }
  0x4c   :  { %147 = vmatprep.subr.mxu0 %v90_v34  ;;  %261 = vmatprep.subr.mxu1 %v212_v49  ;;  %v326_v9 = vld [vmem:[#allocation8 + $0x48] sm:$0xff]  ;;  %v325_v10 = vld [vmem:[#allocation8 + $0x40] sm:$0xff]  ;;  %v324_v11 = vld [vmem:[#allocation8 + $0x38] sm:$0xff] }
  0x4d   :  { %148 = vmatpush1.msra.mxu0 %v89_v36  ;;  %262 = vmatpush1.msra.mxu1 %v211_v51  ;;  %v323_v12 = vld [vmem:[#allocation8 + $0x30] sm:$0xff]  ;;  %v322_v13 = vld [vmem:[#allocation8 + $0x28] sm:$0xff]  ;;  %v113_v17 = vld [vmem:[%s696_s2] sm:$0x3] }
  0x4e   :  { %149 = vmatprep.subr.mxu0 %v88_v38  ;;  %263 = vmatprep.subr.mxu1 %v210_v53  ;;  %v118_v19 = vrot.slane %v113_v17, %v117_v16  ;;  %v122_v20 = vrot.slane %v113_v17, %v121_v18  ;;  %v321_v28 = vld [vmem:[#allocation8 + $0x20] sm:$0xff]  ;;  %v320_v29 = vld [vmem:[#allocation8 + $0x18] sm:$0xff]  ;;  %v319_v30 = vld [vmem:[#allocation8 + $0x10] sm:$0xff] }
  0x4f   :  { %150 = vmatpush1.msra.mxu0 %v87_v40  ;;  %264 = vmatpush1.msra.mxu1 %v209_v55  ;;  %v318_v31 = vld [vmem:[#allocation8 + $0x8] sm:$0xff]  ;;  %v317_v32 = vld [vmem:[#allocation8] sm:$0xff]  ;;  %v231_v33 = vld [vmem:[%s698_s4] sm:$0x3]  ;;  %s572_s4 = scalar_lea.vmem %s418_s27, 32 }
  0x50   :  { %151 = vmatprep.subr.mxu0 %v86_v42  ;;  %265 = vmatprep.subr.mxu1 %v208_v56  ;;  %v236_v34 = vrot.slane %v231_v33, %v117_v16  ;;  %v240_v35 = vrot.slane %v231_v33, %v121_v18  ;;  %v428_v43 = vld [vmem:[%s700_s6] ss:$0 sm:$0xff]  ;;  %p573_p6 = scmp.ne.s32.totalorder %s418_s27, %s572_s4  ;;  %p578_p8 = scmp.lt.s32.totalorder %s572_s4, %s572_s4 }
  0x51   :  { %152 = vmatpush1.msra.mxu0 %v85_v44  ;;  %266 = vmatpush1.msra.mxu1 %v207_v57 }
  0x52   :  { %153 = vmatprep.subr.mxu0 %v84_v46  ;;  %267 = vmatprep.subr.mxu1 %v206_v58  ;;  %p579_p9 = por %p578_p8, %p577_p7 }
  0x53   :  { %154 = vmatpush1.msra.mxu0 %v83_v48  ;;  %268 = vmatpush1.msra.mxu1 %v205_v59 }
  0x54   :  { %155 = vmatprep.subr.mxu0 %v82_v50  ;;  %269 = vmatprep.subr.mxu1 %v204_v60  ;;  %p580_p10 = pnand %p579_p9, %p573_p6 }
  0x55   :  { %156 = vmatpush1.msra.mxu0 %v81_v52  ;;  %270 = vmatpush1.msra.mxu1 %v203_v61 }
  0x56   :  { %190 = vmatmul.mubr.f32.vlgmr.msra.gmra.mxu0 %v80_v54  ;;  %446 = vmatprep.subr.mxu0 %v608_v0 }
  0x57   :  { %271 = vmatprep.subr.mxu1 %v202_v62  ;;  %447 = vmatpush3.msra.mxu0 %v332_v3 }
  0x58   :  { %272 = vmatpush1.msra.mxu1 %v201_v63  ;;  %448 = vmatprep.subr.mxu0 %v608_v0 }
  0x59   :  { %273 = vmatprep.subr.mxu1 %v200_v1  ;;  %449 = vmatpush3.msra.mxu0 %v331_v4 }
  0x5a   :  { %274 = vmatpush1.msra.mxu1 %v199_v2  ;;  %450 = vmatprep.subr.mxu0 %v608_v0 }
  0x5b   :  { %451 = vmatpush3.msra.mxu0 %v330_v5  ;;  %478 = vmatprep.mubr.msk.f32.mxu0 %vm609_vm0, %v608_v0 }
  0x5c   :  { %452 = vmatprep.subr.mxu0 %v608_v0 }
  0x5d   :  { %453 = vmatpush3.msra.mxu0 %v329_v6 }
  0x5e   :  { %454 = vmatprep.subr.mxu0 %v608_v0 }
  0x5f   :  { %455 = vmatpush3.msra.mxu0 %v328_v7 }
  0x60   :  { %456 = vmatprep.subr.mxu0 %v608_v0 }
  0x61   :  { %457 = vmatpush3.msra.mxu0 %v327_v8 }
  0x62   :  { %458 = vmatprep.subr.mxu0 %v608_v0 }
  0x63   :  { %459 = vmatpush3.msra.mxu0 %v326_v9 }
  0x64   :  { %460 = vmatprep.subr.mxu0 %v608_v0 }
  0x65   :  { %461 = vmatpush3.msra.mxu0 %v325_v10 }
  0x66   :  { %462 = vmatprep.subr.mxu0 %v608_v0 }
  0x67   :  { %463 = vmatpush3.msra.mxu0 %v324_v11 }
  0x68   :  { %464 = vmatprep.subr.mxu0 %v608_v0 }
  0x69   :  { %465 = vmatpush3.msra.mxu0 %v323_v12 }
  0x6a   :  { %466 = vmatprep.subr.mxu0 %v608_v0 }
  0x6b   :  { %467 = vmatpush3.msra.mxu0 %v322_v13 }
  0x6c   :  { %468 = vmatprep.subr.mxu0 %v608_v0 }
  0x6d   :  { %469 = vmatpush3.msra.mxu0 %v321_v28 }
  0x6e   :  { %470 = vmatprep.subr.mxu0 %v608_v0 }
  0x6f   :  { %471 = vmatpush3.msra.mxu0 %v320_v29 }
  0x70   :  { %472 = vmatprep.subr.mxu0 %v608_v0 }
  0x71   :  { %473 = vmatpush3.msra.mxu0 %v319_v30 }
  0x72   :  { %474 = vmatprep.subr.mxu0 %v608_v0 }
  0x73   :  { %475 = vmatpush3.msra.mxu0 %v318_v31 }
  0x74   :  { %476 = vmatprep.subr.mxu0 %v608_v0 }
  0x75   :  { %477 = vmatpush3.msra.mxu0 %v317_v32 }
 0x116   :  { %v191_v21 = vpop.f32.mrf.mxu0 }
 0x117   :  { %v192_v22 = vadd.f32 %v191_v21, %v118_v19 }
 0x118   :  { %v193_v23 = vpop.f32.mrf.mxu0 }
 0x119   :  { %v194_v24 = vadd.f32 %v193_v23, %v122_v20  ;;  %v196_v25 = vmax.f32 %v192_v22, 0.0 }
 0x11b   :  { %v197_v26 = vmax.f32 %v194_v24, 0.0 }
 0x11d   :  { %v198_v27 = vmax.f32 %v196_v25, %v197_v26 }
 0x11f   :  { %308 = vmatmul.mubr.f32.vlgmr.msra.gmra.mxu1 %v198_v27 }
 0x1df   :  { %v309_v36 = vpop.f32.mrf.mxu1 }
 0x1e0   :  { %v310_v37 = vadd.f32 %v309_v36, %v236_v34 }
 0x1e1   :  { %v311_v38 = vpop.f32.mrf.mxu1 }
 0x1e2   :  { %v312_v39 = vadd.f32 %v311_v38, %v240_v35  ;;  %v314_v40 = vmax.f32 %v310_v37, 0.0 }
 0x1e4   :  { %v315_v41 = vmax.f32 %v312_v39, 0.0 }
 0x1e6   :  { %v316_v42 = vmax.f32 %v314_v40, %v315_v41 }
 0x1e8   :  { %479 = vmatmul.mubr.f32.vlgmr.msra.gmra.mxu0 %v316_v42 }
 0x2a8   :  { %v406_v0 = vpop.f32.mrf.mxu0 }
 0x2a9   :  { %v407_v44 = vadd.f32 %v428_v43, %v406_v0 }
 0x2aa   :  { %v480_v45 = vpop.f32.mrf.mxu0 }
 0x2ab   :  { %410 = vst [vmem:[#allocation10] sm:$0x3] %v407_v44 }
 0x2ac   :  { %583 = shalt.err (!%p580_p10)
}
 0x2ad   :  { %420 = dma.vmem_to_hbm [thread:$0]  %s418_s27, 32, %s701_s7, [#allocation4]  }
 0x2ae   :  { %598 = dma.done.wait [#allocation4], 32  }
 0x2af   :  { %599 = vsyncadd [#allocation4], 4294967264 }
 0x2b0   :  { %424 = vsyncpa [#allocation3], 1 }
 0x2b1   :  { %425 = vsyncpa [#allocation6], 1 }
 0x2b2   :  { %426 = vsyncpa [#allocation9], 1 }
 0x2b3   :  { %427 = vsyncpa [#allocation4], 1 }

</bundles_post_ra>
